<compile_context>
chip_gen: v5e
topology: v5e:2x2
jax: 0.10.0
libtpu: 0.0.40
codegen_flags: <defaults>
</compile_context>

<pallas_src>
import functools

import jax
import jax.numpy as jnp
from jax.experimental import pallas as pl
from jax.experimental.pallas import tpu as pltpu

IN_FEATURES = 50 * 4 * 4      # 800
HIDDEN = 100
HID_PAD = 128                 # lane-dense hidden width
OUT_CLASSES = 2
OUT_PAD = 128                 # lane-dense logits width
BN_EPS = 1e-5


def _round_up(v, m):
    return ((v + m - 1) // m) * m


def _fc1_stats_kernel(x_ref, w1_ref, b1_ref, h_ref, stats_ref, *, actual_b):
    """fc1 on one batch tile + per-tile BN partial sums (sum / sum of squares)."""
    tb = x_ref.shape[0]
    i = pl.program_id(0)
    # bf16 inputs, f32 MXU accumulation.
    h = jnp.dot(x_ref[...], w1_ref[...],
                preferred_element_type=jnp.float32) + b1_ref[...]
    h_ref[...] = h
    # Mask rows beyond the true batch so padding never pollutes BN statistics.
    rows = i * tb + jax.lax.broadcasted_iota(jnp.int32, (tb, 1), 0)
    hm = jnp.where(rows < actual_b, h, 0.0)
    hsum = jnp.sum(hm, axis=0, keepdims=True)       # (1, HID_PAD)
    hsq = jnp.sum(hm * hm, axis=0, keepdims=True)   # (1, HID_PAD)
    # Build the full (8, HID_PAD) stats tile in registers -> one unmasked store.
    r = jax.lax.broadcasted_iota(jnp.int32, (8, HID_PAD), 0)
    stats_ref[...] = jnp.where(r == 0, hsum, 0.0) + jnp.where(r == 1, hsq, 0.0)


def _bn_relu_fc2_lsm_kernel(h_ref, stats_ref, gamma_ref, beta_ref, w2_ref,
                            b2_ref, out_ref, *, actual_b):
    """In-kernel BN fold + ReLU + fc2 + masked log-softmax, lane-dense output."""
    # Reduce the per-tile partial sums (rows 8*t -> sum, 8*t+1 -> sumsq).
    stats = stats_ref[...]                                    # (nt*8, HID_PAD)
    r = jax.lax.broadcasted_iota(jnp.int32, stats.shape, 0) & 7
    s = jnp.sum(jnp.where(r == 0, stats, 0.0), axis=0, keepdims=True)
    ss = jnp.sum(jnp.where(r == 1, stats, 0.0), axis=0, keepdims=True)
    inv_b = 1.0 / actual_b
    mean = s * inv_b
    var = jnp.maximum(ss * inv_b - mean * mean, 0.0)          # biased (training) var
    invstd = jax.lax.rsqrt(var + BN_EPS)
    scale = gamma_ref[...] * invstd
    shift = beta_ref[...] - mean * scale

    a = jnp.maximum(h_ref[...] * scale + shift, 0.0)
    logits = jnp.dot(a, w2_ref[...],
                     preferred_element_type=jnp.float32) + b2_ref[...]
    # Mask padded logit columns so they do not corrupt the log-softmax.
    col = jax.lax.broadcasted_iota(jnp.int32, logits.shape, 1)
    logits = jnp.where(col < OUT_CLASSES, logits, -1e30)
    m = jnp.max(logits, axis=1, keepdims=True)
    lse = m + jnp.log(jnp.sum(jnp.exp(logits - m), axis=1, keepdims=True))
    out_ref[...] = (logits - lse).astype(out_ref.dtype)


def domain_classifier_forward(x, params, reverse=False, lambd=1.0, tb=None):
    """Forward pass of Domain_Classifier (training-mode BatchNorm).
    # TODO(synk): ReverseLayerF only alters gradients; a custom_vjp would be
    # needed for training-time gradient reversal. Forward values are identity.
    """
    del reverse, lambd
    w1, b1, gamma, beta, w2, b2 = params
    B = x.shape[0]
    assert x.shape[1] == IN_FEATURES

    # Batch tile: 256 rows by default (fits v5e 16 MiB / v7x 32 MiB scoped
    # VMEM with double-buffering), clamped to the (8-aligned) batch size.
    if tb is None:
        tb = 256 if B > 256 else _round_up(B, 8)
    tb = _round_up(min(tb, _round_up(B, 8)), 8)
    B_pad = _round_up(B, tb)
    num_tiles = B_pad // tb

    # bf16 streaming operands for fc1 (MXU-native, halves dominant DMA traffic).
    x_p = jnp.pad(x, ((0, B_pad - B), (0, 0))).astype(jnp.bfloat16)
    w1_p = jnp.pad(w1, ((0, 0), (0, HID_PAD - HIDDEN))).astype(jnp.bfloat16)
    b1_p = jnp.pad(b1, (0, HID_PAD - HIDDEN)).reshape(1, HID_PAD).astype(jnp.float32)

    cost1 = pl.CostEstimate(
        flops=2 * B_pad * IN_FEATURES * HID_PAD,
        transcendentals=0,
        bytes_accessed=(B_pad * IN_FEATURES * 2 + IN_FEATURES * HID_PAD * 2
                        + B_pad * HID_PAD * 4 + num_tiles * 8 * HID_PAD * 4))

    h, stats = pl.pallas_call(
        functools.partial(_fc1_stats_kernel, actual_b=B),
        grid=(num_tiles,),
        in_specs=[
            pl.BlockSpec((tb, IN_FEATURES), lambda i: (i, 0)),       # x tile
            pl.BlockSpec((IN_FEATURES, HID_PAD), lambda i: (0, 0)),  # w1
            pl.BlockSpec((1, HID_PAD), lambda i: (0, 0)),            # b1
        ],
        out_specs=[
            pl.BlockSpec((tb, HID_PAD), lambda i: (i, 0)),           # h tile
            pl.BlockSpec((8, HID_PAD), lambda i: (i, 0)),            # partial stats
        ],
        out_shape=[
            jax.ShapeDtypeStruct((B_pad, HID_PAD), jnp.float32),
            jax.ShapeDtypeStruct((num_tiles * 8, HID_PAD), jnp.float32),
        ],
        compiler_params=pltpu.CompilerParams(
            dimension_semantics=("parallel",),
            vmem_limit_bytes=32 * 1024 * 1024),
        cost_estimate=cost1,
    )(x_p, w1_p, b1_p)

    gamma_p = jnp.pad(gamma, (0, HID_PAD - HIDDEN)).reshape(1, HID_PAD).astype(jnp.float32)
    beta_p = jnp.pad(beta, (0, HID_PAD - HIDDEN)).reshape(1, HID_PAD).astype(jnp.float32)
    w2_p = jnp.pad(w2, ((0, HID_PAD - HIDDEN),
                        (0, OUT_PAD - OUT_CLASSES))).astype(jnp.float32)
    b2_p = jnp.pad(b2, (0, OUT_PAD - OUT_CLASSES)).reshape(1, OUT_PAD).astype(jnp.float32)

    cost2 = pl.CostEstimate(
        flops=2 * B_pad * HID_PAD * OUT_PAD + 8 * B_pad * HID_PAD,
        transcendentals=B_pad * (OUT_PAD + 1) + num_tiles * HID_PAD,
        bytes_accessed=(B_pad * HID_PAD * 4 + num_tiles * 8 * HID_PAD * 4
                        + HID_PAD * OUT_PAD * 4 + B_pad * OUT_PAD * 4))

    out_pad = pl.pallas_call(
        functools.partial(_bn_relu_fc2_lsm_kernel, actual_b=B),
        grid=(num_tiles,),
        in_specs=[
            pl.BlockSpec((tb, HID_PAD), lambda i: (i, 0)),                  # h tile
            pl.BlockSpec((num_tiles * 8, HID_PAD), lambda i: (0, 0)),       # all stats
            pl.BlockSpec((1, HID_PAD), lambda i: (0, 0)),                   # gamma
            pl.BlockSpec((1, HID_PAD), lambda i: (0, 0)),                   # beta
            pl.BlockSpec((HID_PAD, OUT_PAD), lambda i: (0, 0)),             # w2
            pl.BlockSpec((1, OUT_PAD), lambda i: (0, 0)),                   # b2
        ],
        out_specs=pl.BlockSpec((tb, OUT_PAD), lambda i: (i, 0)),
        out_shape=jax.ShapeDtypeStruct((B_pad, OUT_PAD), jnp.float32),
        compiler_params=pltpu.CompilerParams(
            dimension_semantics=("parallel",),
            vmem_limit_bytes=32 * 1024 * 1024),
        cost_estimate=cost2,
    )(h, stats, gamma_p, beta_p, w2_p, b2_p)

    return out_pad[:B, :OUT_CLASSES]


def init_params(key):
    """PyTorch-default-like init. Linear weights stored as (in, out)."""
    k1, k2, k3, k4 = jax.random.split(key, 4)
    bound1 = 1.0 / jnp.sqrt(jnp.float32(IN_FEATURES))
    bound2 = 1.0 / jnp.sqrt(jnp.float32(HIDDEN))
    w1 = jax.random.uniform(k1, (IN_FEATURES, HIDDEN), jnp.float32, -bound1, bound1)
    b1 = jax.random.uniform(k2, (HIDDEN,), jnp.float32, -bound1, bound1)
    gamma = jnp.ones((HIDDEN,), jnp.float32)
    beta = jnp.zeros((HIDDEN,), jnp.float32)
    w2 = jax.random.uniform(k3, (HIDDEN, OUT_CLASSES), jnp.float32, -bound2, bound2)
    b2 = jax.random.uniform(k4, (OUT_CLASSES,), jnp.float32, -bound2, bound2)
    return (w1, b1, gamma, beta, w2, b2)


def _reference(x, params):
    """Pure-JAX reference (same bf16 fc1 inputs as the kernel)."""
    w1, b1, gamma, beta, w2, b2 = params
    h = jnp.dot(x.astype(jnp.bfloat16), w1.astype(jnp.bfloat16),
                preferred_element_type=jnp.float32) + b1
    mean = jnp.mean(h, axis=0, keepdims=True)
    var = jnp.mean((h - mean) ** 2, axis=0, keepdims=True)   # biased (training)
    hn = (h - mean) * jax.lax.rsqrt(var + BN_EPS)
    a = jnp.maximum(hn * gamma + beta, 0.0)
    logits = jnp.dot(a, w2, preferred_element_type=jnp.float32) + b2
    return jax.nn.log_softmax(logits, axis=1)


if __name__ == "__main__":
    key = jax.random.PRNGKey(0)
    k_x, k_p = jax.random.split(key)

    # B not a multiple of the tile -> exercises batch padding mask; tb=8 gives
    # a 3-tile BN reduction, tb=None gives the single-tile path.
    B = 20
    x = jax.random.normal(k_x, (B, IN_FEATURES), dtype=jnp.float32)
    params = init_params(k_p)

    ref = _reference(x, params)

    for tile in (8, None):
        out = jax.block_until_ready(domain_classifier_forward(x, params, tb=tile))
        assert out.shape == (B, OUT_CLASSES)
        # Sanity: log-softmax rows sum (in prob space) to ~1.
        probs_sum = jnp.sum(jnp.exp(out), axis=1)
        assert bool(jnp.all(jnp.abs(probs_sum - 1.0) < 1e-4))
        # Match the pure-JAX reference.
        assert bool(jnp.all(jnp.abs(out - ref) < 5e-3)), "mismatch vs reference"

    print("KERNEL_OK")
</pallas_src>

<mosaic_0001>
module attributes {stable_mosaic.version = 11 : i64} {
  func.func @_fc1_stats_kernel(%arg0: i32, %arg1: memref<8x800xbf16, #tpu.memory_space<vmem>>, %arg2: memref<800x128xbf16, #tpu.memory_space<vmem>>, %arg3: memref<1x128xf32, #tpu.memory_space<vmem>>, %arg4: memref<8x128xf32, #tpu.memory_space<vmem>>, %arg5: memref<8x128xf32, #tpu.memory_space<vmem>>) attributes {dimension_semantics = [#tpu.dimension_semantics<parallel>], iteration_bounds = array<i64: 3>, scalar_prefetch = 0 : i64, scratch_operands = 0 : i64, tpu.core_type = #tpu.core_type<tc>, window_params = [{transform_indices = @transform_0, window_bounds = array<i64: 8, 800>}, {pipeline_mode = #tpu.pipeline_mode<synchronous>, transform_indices = @transform_1, window_bounds = array<i64: 800, 128>}, {pipeline_mode = #tpu.pipeline_mode<synchronous>, transform_indices = @transform_2, window_bounds = array<i64: 1, 128>}, {transform_indices = @transform_3, window_bounds = array<i64: 8, 128>}, {transform_indices = @transform_4, window_bounds = array<i64: 8, 128>}]} {
    %c0 = arith.constant 0 : index
    %c0_0 = arith.constant 0 : index
    %0 = vector.load %arg1[%c0, %c0_0] : memref<8x800xbf16, #tpu.memory_space<vmem>>, vector<8x800xbf16>
    %c0_1 = arith.constant 0 : index
    %c0_2 = arith.constant 0 : index
    %1 = vector.load %arg2[%c0_1, %c0_2] : memref<800x128xbf16, #tpu.memory_space<vmem>>, vector<800x128xbf16>
    %cst = arith.constant dense<0.000000e+00> : vector<8x128xf32>
    %2 = tpu.matmul %0, %1, %cst {dimension_numbers = #tpu.dot_dimension_numbers<[1], [0], [0], [1], [0, 0, 1, 1], [], []>} : vector<8x800xbf16>, vector<800x128xbf16>, vector<8x128xf32> -> vector<8x128xf32>
    %c0_3 = arith.constant 0 : index
    %c0_4 = arith.constant 0 : index
    %3 = vector.load %arg3[%c0_3, %c0_4] : memref<1x128xf32, #tpu.memory_space<vmem>>, vector<1x128xf32>
    %4 = vector.broadcast %3 : vector<1x128xf32> to vector<8x128xf32>
    %5 = arith.addf %2, %4 : vector<8x128xf32>
    %c0_5 = arith.constant 0 : index
    %c0_6 = arith.constant 0 : index
    %6 = vector.load %arg4[%c0_5, %c0_6] : memref<8x128xf32, #tpu.memory_space<vmem>>, vector<8x128xf32>
    tpu.vector_store %arg4[%c0_5, %c0_6], %5 {strides = array<i32>} : memref<8x128xf32, #tpu.memory_space<vmem>>, vector<8x128xf32>,
    %c8_i32 = arith.constant 8 : i32
    %7 = arith.muli %arg0, %c8_i32 : i32
    %8 = tpu.iota {dimensions = array<i32: 0>} : vector<8x1xi32>
    %9 = vector.broadcast %7 : i32 to vector<8x1xi32>
    %10 = arith.addi %9, %8 : vector<8x1xi32>
    %c20_i32 = arith.constant 20 : i32
    %11 = vector.broadcast %c20_i32 : i32 to vector<8x1xi32>
    %12 = arith.cmpi slt, %10, %11 : vector<8x1xi32>
    %cst_7 = arith.constant 0.000000e+00 : f32
    %13 = vector.shape_cast %12 : vector<8x1xi1> to vector<8x1xi1>
    %14 = vector.broadcast %13 : vector<8x1xi1> to vector<8x128xi1>
    %15 = vector.broadcast %cst_7 : f32 to vector<8x128xf32>
    %16 = arith.select %14, %5, %15 : vector<8x128xi1>, vector<8x128xf32>
    %cst_8 = arith.constant dense<0.000000e+00> : vector<128xf32>
    %17 = vector.multi_reduction <add>, %16, %cst_8 [0] : vector<8x128xf32> to vector<128xf32>
    %18 = vector.shape_cast %17 : vector<128xf32> to vector<1x128xf32>
    %19 = arith.mulf %16, %16 : vector<8x128xf32>
    %cst_9 = arith.constant dense<0.000000e+00> : vector<128xf32>
    %20 = vector.multi_reduction <add>, %19, %cst_9 [0] : vector<8x128xf32> to vector<128xf32>
    %21 = vector.shape_cast %20 : vector<128xf32> to vector<1x128xf32>
    %22 = tpu.iota {dimensions = array<i32: 0>} : vector<8x128xi32>
    %c0_i32 = arith.constant 0 : i32
    %23 = vector.broadcast %c0_i32 : i32 to vector<8x128xi32>
    %24 = arith.cmpi eq, %22, %23 : vector<8x128xi32>
    %cst_10 = arith.constant 0.000000e+00 : f32
    %25 = vector.shape_cast %18 : vector<1x128xf32> to vector<1x128xf32>
    %26 = vector.broadcast %25 : vector<1x128xf32> to vector<8x128xf32>
    %27 = vector.broadcast %cst_10 : f32 to vector<8x128xf32>
    %28 = arith.select %24, %26, %27 : vector<8x128xi1>, vector<8x128xf32>
    %c1_i32 = arith.constant 1 : i32
    %29 = vector.broadcast %c1_i32 : i32 to vector<8x128xi32>
    %30 = arith.cmpi eq, %22, %29 : vector<8x128xi32>
    %cst_11 = arith.constant 0.000000e+00 : f32
    %31 = vector.shape_cast %21 : vector<1x128xf32> to vector<1x128xf32>
    %32 = vector.broadcast %31 : vector<1x128xf32> to vector<8x128xf32>
    %33 = vector.broadcast %cst_11 : f32 to vector<8x128xf32>
    %34 = arith.select %30, %32, %33 : vector<8x128xi1>, vector<8x128xf32>
    %35 = arith.addf %28, %34 : vector<8x128xf32>
    %c0_12 = arith.constant 0 : index
    %c0_13 = arith.constant 0 : index
    %36 = vector.load %arg5[%c0_12, %c0_13] : memref<8x128xf32, #tpu.memory_space<vmem>>, vector<8x128xf32>
    tpu.vector_store %arg5[%c0_12, %c0_13], %35 {strides = array<i32>} : memref<8x128xf32, #tpu.memory_space<vmem>>, vector<8x128xf32>,
    return
  }
  func.func @transform_0(%arg0: i32) -> (i32, i32) {
    %c0_i32 = arith.constant 0 : i32
    %c0_i32_0 = arith.constant 0 : i32
    return %arg0, %c0_i32 : i32, i32
  }
  func.func @transform_1(%arg0: i32) -> (i32, i32) {
    %c0_i32 = arith.constant 0 : i32
    %c0_i32_0 = arith.constant 0 : i32
    %c0_i32_1 = arith.constant 0 : i32
    return %c0_i32, %c0_i32_0 : i32, i32
  }
  func.func @transform_2(%arg0: i32) -> (i32, i32) {
    %c0_i32 = arith.constant 0 : i32
    %c0_i32_0 = arith.constant 0 : i32
    %c0_i32_1 = arith.constant 0 : i32
    return %c0_i32, %c0_i32_0 : i32, i32
  }
  func.func @transform_3(%arg0: i32) -> (i32, i32) {
    %c0_i32 = arith.constant 0 : i32
    %c0_i32_0 = arith.constant 0 : i32
    return %arg0, %c0_i32 : i32, i32
  }
  func.func @transform_4(%arg0: i32) -> (i32, i32) {
    %c0_i32 = arith.constant 0 : i32
    %c0_i32_0 = arith.constant 0 : i32
    return %arg0, %c0_i32 : i32, i32
  }
}

</mosaic_0001>

<bundles_post_ra>
// kernel: tpu_custom_call.1
= control target key start
LH: loop header
LB: loop body
LE: loop exit
PB: predicated region body
PF: predicated region fallthrough
CT: control target
= control target key end

     0   :  { %s1643_s0 = inlined_call_operand.hbm [shape: bf16[24,800], index: 0, kind: input, shape index: {}]   ;;  %s1644_s1 = inlined_call_operand.hbm [shape: bf16[800,128], index: 1, kind: input, shape index: {}]   ;;  %s1645_s2 = inlined_call_operand.vmem [shape: f32[1,128], index: 2, kind: input, shape index: {}]   ;;  %s1646_s3 = inlined_call_operand.hbm [shape: f32[24,128], index: 3, kind: output, shape index: {0}]   ;;  %s1647_s4 = inlined_call_operand.hbm [shape: f32[24,128], index: 4, kind: output, shape index: {1}]  }
   0x1   :  { %1648 = sst [smem:[#allocation14_spill]] %s1644_s1 }
   0x2   :  { %10 = vsyncpa [#allocation3], 0 }
   0x3   :  { %12 = vsyncpa [#allocation3 + $0x1], 0 }
   0x4   :  { %13 = vsyncpa [#allocation6], 0 }
   0x5   :  { %14 = vsyncpa [#allocation4], 0 }
   0x6   :  { %16 = vsyncpa [#allocation4 + $0x1], 0 }
   0x7   :  { %17 = vsyncpa [#allocation9], 0 }
   0x8   :  { %19 = vsyncpa [#allocation9 + $0x1], 0  ;;  %s1476_s15 = smov 0   ;;  %s1478_s16 = smov 0  }
   0x9   :  { %s1480_s17 = smov 0   ;;  %s1482_s18 = smov 0  }
   0xa LB: > { %s1649_s1 = sld [smem:[#allocation14_spill]]  ;;  %s1500_s22 = sadd.s32 4294967295, %s1446_s18   ;;  %s1446_s18 = sphi %s1482_s18, %s1658_s18   ;;  %s1442_s17 = sphi %s1480_s17, %s1657_s17   ;;  %s1438_s16 = sphi %s1478_s16, %s1656_s16   ;;  %s1434_s15 = sphi %s1476_s15, %s1655_s15  }
   0xb   : > { %p950_p0 = scmp.ge.s32.totalorder %s1446_s18, 1  ;;  %p46_p1 = scmp.eq.s32.totalorder %s1500_s22, 0 }
   0xc   : > { %p150_p2 = scmp.lt.s32.totalorder %s1446_s18, 4  ;;  %s1448_s24 = smov [#allocation5]  }
   0xd   : > { %s163_s25 = sshll.u32 %s1448_s24, 4  ;;  %s1449_s26 = smov 64   ;;  %s164_s25 = int_to_ptr.vmem [resolvable:$true] %s163_s25 }
   0xe   : > { %p1505_p3 = pnand %p950_p0, %p150_p2  ;;  %s1450_s27 = smov 4  }
   0xf   : > { %s949_s28 = sadd.s32 4294967294, %s1446_s18   ;;  %s1515_s29 = sadd.s32 1, %s1446_s18  }
  0x10   : > { %s161_s21 = sshll.u32 %s1649_s1, 4  ;;  %p1229_p4 = pneg %p1505_p3  ;;  %s162_s21 = int_to_ptr.hbm [resolvable:$true] %s161_s21 }
  0x11   : > { %s32_s30 = sadd.s32 1, %s1442_s17  ;;  %s29_s5 = ssub.s32 %s1446_s18, %s1515_s29 }
  0x12   : > { %p1230_p5 = pnand %p1229_p4, %p46_p1  ;;  %p39_p6 = scmp.ne.s32.totalorder %s1442_s17, %s1438_s16 }
  0x13   : > { %p30_p7 = scmp.eq.s32.totalorder %s29_s5, 0  ;;  %p40_p8 = scmp.eq.s32.totalorder %s1446_s18, 0 }
  0x14   : > { %1232 = dma.hbm_to_vmem [thread:$0]  (!%p1230_p5), %s162_s21, 6400, %s164_s25, [#allocation6], %s1449_s26, %s1449_s26, %s1450_s27  }
  0x15   : > { %p45_p9 = scmp.ne.s32.totalorder %s1438_s16, %s1434_s15  ;;  %p111_p10 = scmp.eq.s32.totalorder %s1500_s22, 2 }
  0x16   : > { %s1527_s6 = scalar_select %p30_p7, %s1442_s17, %s32_s30  }
  0x17   : > { %p41_p11 = por %p40_p8, %p39_p6  ;;  %p1531_p12 = por %p46_p1, %p45_p9 }
  0x18   : > { %p1535_p13 = por %p111_p10, %p39_p6  ;;  %p117_p0 = scmp.eq.s32.totalorder %s949_s28, 2 }
  0x19   : > { %p1245_p2 = scmp.lt.s32.totalorder %s1446_s18, 3  ;;  %s180_s9 = sand.u32 1, %s1442_s17  }
  0x1a   : > { %p1541_p4 = por %p117_p0, %p45_p9  ;;  %s1216_s11 = smul.u32 28, %s180_s9 }
  0x1b   : > { %p1545_p5 = pnand %p1245_p2, %p41_p11  ;;  %s1217_s13 = smul.u32 28, %s1446_s18 }
  0x1c   : > { %s184_s21 = scalar_lea.vmem [#allocation2], %s1216_s11  ;;  %s181_s26 = scalar_lea.sflag [#allocation3], %s180_s9 }
  0x1d   : > { %s189_s20 = scalar_lea.hbm %s1643_s0, %s1217_s13  ;;  %s193_s24 = sshll.u32 %s184_s21, 4  ;;  %s194_s24 = int_to_ptr.vmem [resolvable:$true] %s193_s24 }
  0x1e   : > { %s191_s25 = sshll.u32 %s189_s20, 4  ;;  %p1318_p7 = pneg %p1545_p5  ;;  %s192_s25 = int_to_ptr.hbm [resolvable:$true] %s191_s25 }
  0x1f   : > { %s1314_s27 = sshra.s32 %s192_s25, 4  ;;  %s1321_s1 = scalar_lea.hbm %s1643_s0, 84  ;;  %s1315_s27 = int_to_ptr.hbm [resolvable:$true] %s1314_s27 }
  0x20   : > { %s1316_s28 = scalar_lea.hbm %s1315_s27, 28  ;;  %p1322_p10 = scmp.lt.s32.totalorder %s1315_s27, %s1643_s0 }
  0x21   : > { %p1317_p6 = scmp.ne.s32.totalorder %s1315_s27, %s1316_s28  ;;  %p1323_p11 = scmp.lt.s32.totalorder %s1321_s1, %s1316_s28 }
  0x23   : > { %p1319_p8 = pnand %p1318_p7, %p1317_p6  ;;  %p1324_p0 = por %p1323_p11, %p1322_p10 }
  0x25   : > { %p1320_p9 = pneg %p1319_p8 }
  0x27   : > { %p1325_p2 = pnand %p1324_p0, %p1320_p9 }
  0x29   : > { %1328 = shalt.err (!%p1325_p2)
}
  0x2a   : > { %1236 = dma.hbm_to_vmem [thread:$0]  (!%p1545_p5), %s192_s25, 448, %s194_s24, %s181_s26  }
  0x2b   : > { %202 = sbr.rel (%p1505_p3) target bundleno = 269 (0x10d), region = 32  ;;  %s1566_s9 = sand.u32 (!%p1505_p3), 1, %s1438_s16  }
  0x2c   : > { %s1218_s11 = smul.u32 (!%p1505_p3), 28, %s1566_s9  ;;  %s205_s19 = scalar_lea.sflag (!%p1505_p3), [#allocation3], %s1566_s9 }
  0x2e   : > { %s1570_s20 = scalar_lea.vmem (!%p1505_p3), [#allocation2], %s1218_s11 }
  0x30   : > { %1417 = dma.done.wait (%p1531_p12), %s205_s19, 448  }
  0x31   : > { %1419 = vsyncadd (%p1531_p12), %s205_s19, 4294966848 }
  0x32   : > { %1421 = dma.done.wait (%p46_p1), [#allocation6], 6400  }
  0x33   : > { %1423 = vsyncadd (%p46_p1), [#allocation6], 4294960896  ;;  %v1173_v0 = vld [vmem:[#allocation5 + $0x38] sm:$0xff]  ;;  %v1172_v3 = vld [vmem:[#allocation5 + $0x30] sm:$0xff]  ;;  %vm677_vm0 = vcmask 261120   ;;  %s1588_s7 = sshll.u32 %s1500_s22, 3 }
  0x34   : > { %v1181_v1 = vld [vmem:[#allocation5 + $0x78] sm:$0xff]  ;;  %681 = vmatpush.bf16.msra.mxu0 %v1173_v0  ;;  %v1180_v4 = vld [vmem:[#allocation5 + $0x70] sm:$0xff]  ;;  %v1171_v8 = vld [vmem:[#allocation5 + $0x28] sm:$0xff]  ;;  %s956_s12 = sshll.u32 %s1566_s9, 3  ;;  %s817_s25 = scalar_lea.hbm %s1646_s3, %s1588_s7 }
  0x35   : > { %v1189_v2 = vld [vmem:[#allocation5 + $0xb8] sm:$0xff]  ;;  %694 = vmatpush.bf16.msra.mxu1 %v1181_v1  ;;  %v1188_v5 = vld [vmem:[#allocation5 + $0xb0] sm:$0xff]  ;;  %v1179_v9 = vld [vmem:[#allocation5 + $0x68] sm:$0xff]  ;;  %s236_s22 = scalar_lea.vmem [#allocation7], %s956_s12  ;;  %s821_s27 = sshll.u32 %s817_s25, 4  ;;  %s822_s27 = int_to_ptr.hbm [resolvable:$true] %s821_s27 }
  0x36   : > { %707 = vmatpush.bf16.msra.mxu2 %v1189_v2  ;;  %v1197_v6 = vld [vmem:[#allocation5 + $0xf8] sm:$0xff]  ;;  %v1196_v7 = vld [vmem:[#allocation5 + $0xf0] sm:$0xff]  ;;  %v1187_v10 = vld [vmem:[#allocation5 + $0xa8] sm:$0xff]  ;;  %s819_s26 = sshll.u32 %s236_s22, 4  ;;  %s802_s28 = scalar_lea.sflag [#allocation4], %s1566_s9  ;;  %s820_s26 = int_to_ptr.vmem [resolvable:$true] %s819_s26 }
  0x37   : > { %720 = vmatpush.bf16.msra.mxu3 %v1197_v6  ;;  %v1195_v11 = vld [vmem:[#allocation5 + $0xe8] sm:$0xff]  ;;  %v1170_v12 = vld [vmem:[#allocation5 + $0x20] sm:$0xff]  ;;  %v1169_v16 = vld [vmem:[#allocation5 + $0x18] sm:$0xff]  ;;  %s1358_s30 = sshra.s32 %s822_s27, 4  ;;  %s1364_s11 = scalar_lea.hbm %s1646_s3, 24  ;;  %s1359_s30 = int_to_ptr.hbm [resolvable:$true] %s1358_s30 }
  0x38   : > { %682 = vmatpush.bf16.msra.mxu0 %v1172_v3  ;;  %v1178_v13 = vld [vmem:[#allocation5 + $0x60] sm:$0xff]  ;;  %v1177_v17 = vld [vmem:[#allocation5 + $0x58] sm:$0xff]  ;;  %v1168_v20 = vld [vmem:[#allocation5 + $0x10] sm:$0xff]  ;;  %s1360_s5 = scalar_lea.hbm %s1359_s30, 8  ;;  %p1365_p5 = scmp.lt.s32.totalorder %s1359_s30, %s1646_s3 }
  0x39   : > { %695 = vmatpush.bf16.msra.mxu1 %v1180_v4  ;;  %v1186_v14 = vld [vmem:[#allocation5 + $0xa0] sm:$0xff]  ;;  %v1185_v18 = vld [vmem:[#allocation5 + $0x98] sm:$0xff]  ;;  %v1176_v21 = vld [vmem:[#allocation5 + $0x50] sm:$0xff]  ;;  %p1361_p1 = scmp.ne.s32.totalorder %s1359_s30, %s1360_s5  ;;  %p1366_p6 = scmp.lt.s32.totalorder %s1364_s11, %s1360_s5 }
  0x3a   : > { %708 = vmatpush.bf16.msra.mxu2 %v1188_v5  ;;  %v1194_v15 = vld [vmem:[#allocation5 + $0xe0] sm:$0xff]  ;;  %v1193_v19 = vld [vmem:[#allocation5 + $0xd8] sm:$0xff]  ;;  %v1184_v22 = vld [vmem:[#allocation5 + $0x90] sm:$0xff] }
  0x3b   : > { %721 = vmatpush.bf16.msra.mxu3 %v1196_v7  ;;  %v1192_v23 = vld [vmem:[#allocation5 + $0xd0] sm:$0xff]  ;;  %v1167_v24 = vld [vmem:[#allocation5 + $0x8] sm:$0xff]  ;;  %v1166_v32 = vld [vmem:[#allocation5] sm:$0xff]  ;;  %p1362_p3 = pnand %p1361_p1, %p1535_p13  ;;  %p1367_p7 = por %p1366_p6, %p1365_p5 }
  0x3c   : > { %683 = vmatpush.bf16.msra.mxu0 %v1171_v8  ;;  %v1175_v25 = vld [vmem:[#allocation5 + $0x48] sm:$0xff]  ;;  %v1174_v33 = vld [vmem:[#allocation5 + $0x40] sm:$0xff]  ;;  %v1205_v34 = vld [vmem:[#allocation5 + $0x138] sm:$0xff] }
  0x3d   : > { %696 = vmatpush.bf16.msra.mxu1 %v1179_v9  ;;  %v245_v26 = vld [vmem:[%s1570_s20] sm:$0xff]  ;;  %v246_v28 = vld [vmem:[%s1570_s20 + $0x8] sm:$0xff]  ;;  %v1213_v35 = vld [vmem:[#allocation5 + $0x178] sm:$0xff]  ;;  %p1363_p12 = pneg %p1362_p3 }
  0x3e   : > { %709 = vmatpush.bf16.msra.mxu2 %v1187_v10  ;;  %v1183_v27 = vld [vmem:[#allocation5 + $0x88] sm:$0xff]  ;;  %v357_v29 = vunpack.c.l.b16 %v245_v26  ;;  %v358_v31 = vunpack.c.h.b16 %v245_v26  ;;  %v1182_v36 = vld [vmem:[#allocation5 + $0x80] sm:$0xff]  ;;  %v359_v37 = vunpack.c.l.b16 %v246_v28  ;;  %v360_v40 = vunpack.c.h.b16 %v246_v28  ;;  %v1204_v43 = vld [vmem:[#allocation5 + $0x130] sm:$0xff] }
  0x3f   : > { %722 = vmatpush.bf16.msra.mxu3 %v1195_v11  ;;  %v1191_v30 = vld [vmem:[#allocation5 + $0xc8] sm:$0xff]  ;;  %v1190_v41 = vld [vmem:[#allocation5 + $0xc0] sm:$0xff]  ;;  %v1212_v44 = vld [vmem:[#allocation5 + $0x170] sm:$0xff]  ;;  %p1368_p8 = pnand %p1367_p7, %p1363_p12 }
  0x40   : > { %684 = vmatpush.bf16.msra.mxu0 %v1170_v12  ;;  %v364_v38 = vpack.c.b16 %v357_v29, %v357_v29  ;;  %v365_v39 = vpack.c.b16 %v358_v31, %v358_v31  ;;  %v1215_v42 = vld [vmem:[#allocation5 + $0x188] sm:$0xff]  ;;  %v366_v45 = vpack.c.b16 %v359_v37, %v359_v37  ;;  %v367_v46 = vpack.c.b16 %v360_v40, %v360_v40  ;;  %v1214_v47 = vld [vmem:[#allocation5 + $0x180] sm:$0xff]  ;;  %v1201_v53 = vld [vmem:[#allocation5 + $0x118] sm:$0xff] }
  0x41   : > { %697 = vmatpush.bf16.msra.mxu1 %v1178_v13  ;;  %v1203_v48 = vld [vmem:[#allocation5 + $0x128] sm:$0xff]  ;;  %v1202_v50 = vld [vmem:[#allocation5 + $0x120] sm:$0xff]  ;;  %v1209_v54 = vld [vmem:[#allocation5 + $0x158] sm:$0xff] }
  0x42   : > { %710 = vmatpush.bf16.msra.mxu2 %v1186_v14  ;;  %v1211_v49 = vld [vmem:[#allocation5 + $0x168] sm:$0xff]  ;;  %v1210_v51 = vld [vmem:[#allocation5 + $0x160] sm:$0xff]  ;;  %v1200_v56 = vld [vmem:[#allocation5 + $0x110] sm:$0xff] }
  0x43   : > { %723 = vmatpush.bf16.msra.mxu3 %v1194_v15  ;;  %v248_v52 = vld [vmem:[%s1570_s20 + $0x18] sm:$0xf]  ;;  %v1208_v57 = vld [vmem:[#allocation5 + $0x150] sm:$0xff]  ;;  %v1199_v59 = vld [vmem:[#allocation5 + $0x108] sm:$0xff]  ;;  %v774_v15 = vlaneseq }
  0x44   : > { %685 = vmatpush.bf16.msra.mxu0 %v1169_v16  ;;  %v363_v55 = vunpack.c.l.b16 %v248_v52  ;;  %v1207_v60 = vld [vmem:[#allocation5 + $0x148] sm:$0xff]  ;;  %v247_v61 = vld [vmem:[%s1570_s20 + $0x10] sm:$0xff]  ;;  %v1198_v0 = vld [vmem:[#allocation5 + $0x100] sm:$0xff] }
  0x45   : > { %698 = vmatpush.bf16.msra.mxu1 %v1177_v17  ;;  %v361_v62 = vunpack.c.l.b16 %v247_v61  ;;  %v362_v63 = vunpack.c.h.b16 %v247_v61  ;;  %v1206_v1 = vld [vmem:[#allocation5 + $0x140] sm:$0xff]  ;;  %v1283_v10 = vld [vmem:[%s1645_s2] ss:$0 sm:$0xff] }
  0x46   : > { %711 = vmatpush.bf16.msra.mxu2 %v1185_v18  ;;  %v370_v58 = vpack.c.b16 %v363_v55, %v363_v55  ;;  %v775_v18 = vshrl.u32 %v774_v15, 7 }
  0x47   : > { %724 = vmatpush.bf16.msra.mxu3 %v1193_v19  ;;  %v368_v2 = vpack.c.b16 %v361_v62, %v361_v62  ;;  %v369_v3 = vpack.c.b16 %v362_v63, %v362_v63  ;;  %v776_v19 = vstv %s1588_s7 }
  0x48   : > { %686 = vmatpush.bf16.msra.mxu0 %v1168_v20 }
  0x49   : > { %699 = vmatpush.bf16.msra.mxu1 %v1176_v21 }
  0x4a   : > { %712 = vmatpush.bf16.msra.mxu2 %v1184_v22 }
  0x4b   : > { %725 = vmatpush.bf16.msra.mxu3 %v1192_v23  ;;  %v777_v23 = vadd.s32 %v776_v19, %v775_v18 }
  0x4c   : > { %687 = vmatpush.bf16.msra.mxu0 %v1167_v24 }
  0x4d   : > { %700 = vmatpush.bf16.msra.mxu1 %v1175_v25  ;;  %vm778_vm1 = vcmp.lt.s32.totalorder %v777_v23, 20 }
  0x4e   : > { %713 = vmatpush.bf16.msra.mxu2 %v1183_v27 }
  0x4f   : > { %726 = vmatpush.bf16.msra.mxu3 %v1191_v30 }
  0x50   : > { %688 = vmatpush.bf16.msra.mxu0 %v1166_v32 }
  0x51   : > { %701 = vmatpush.bf16.msra.mxu1 %v1174_v33 }
  0x52   : > { %714 = vmatpush.bf16.msra.mxu2 %v1182_v36 }
  0x53   : > { %689 = vmatmul.bf16.vlgmr.msra.gmra.mxu0 %v364_v38  ;;  %727 = vmatpush.bf16.msra.mxu3 %v1190_v41 }
  0x54   : > { %733 = vmatpush.bf16.msrb.mxu0 %v1205_v34  ;;  %702 = vmatmul.bf16.vlgmr.msra.gmra.mxu1 %v365_v39 }
  0x55   : > { %746 = vmatpush.bf16.msrb.mxu1 %v1213_v35  ;;  %715 = vmatmul.bf16.vlgmr.msra.gmra.mxu2 %v366_v45 }
  0x56   : > { %765 = vmatpush.bf16.msrb.mxu2 %v1215_v42  ;;  %728 = vmatmul.bf16.vlgmr.msra.gmra.mxu3 %v367_v46 }
  0x58   : > { %734 = vmatpush.bf16.msrb.mxu0 %v1204_v43 }
  0x59   : > { %747 = vmatpush.bf16.msrb.mxu1 %v1212_v44 }
  0x5a   : > { %766 = vmatpush.bf16.msrb.mxu2 %v1214_v47 }
  0x5c   : > { %735 = vmatpush.bf16.msrb.mxu0 %v1203_v48 }
  0x5d   : > { %748 = vmatpush.bf16.msrb.mxu1 %v1211_v49 }
  0x60   : > { %736 = vmatpush.bf16.msrb.mxu0 %v1202_v50 }
  0x61   : > { %749 = vmatpush.bf16.msrb.mxu1 %v1210_v51 }
  0x64   : > { %737 = vmatpush.bf16.msrb.mxu0 %v1201_v53 }
  0x65   : > { %750 = vmatpush.bf16.msrb.mxu1 %v1209_v54  ;;  %1158 = vmatmul.msk.bf16.vlgmr.msrb.gmra.mxu2 %vm677_vm0, %v370_v58 }
  0x68   : > { %738 = vmatpush.bf16.msrb.mxu0 %v1200_v56 }
  0x69   : > { %751 = vmatpush.bf16.msrb.mxu1 %v1208_v57 }
  0x6c   : > { %739 = vmatpush.bf16.msrb.mxu0 %v1199_v59 }
  0x6d   : > { %752 = vmatpush.bf16.msrb.mxu1 %v1207_v60 }
  0x70   : > { %740 = vmatpush.bf16.msrb.mxu0 %v1198_v0 }
  0x71   : > { %753 = vmatpush.bf16.msrb.mxu1 %v1206_v1 }
  0x73   : > { %741 = vmatmul.bf16.vlgmr.msrb.gmra.mxu0 %v368_v2 }
  0x74   : > { %754 = vmatmul.bf16.vlgmr.msrb.gmra.mxu1 %v369_v3 }
  0xd0   : > { %v690_v4 = vpop.f32.mrf.mxu0 }
  0xd1   : > { %v703_v5 = vpop.f32.mrf.mxu1  ;;  %v691_v11 = vadd.f32 %v1283_v10, %v690_v4 }
  0xd3   : > { %v704_v14 = vadd.f32 %v703_v5, %v691_v11 }
  0xd8   : > { %v692_v6 = vpop.f32.mrf.mxu0  ;;  %v716_v8 = vpop.f32.mrf.mxu2 }
  0xd9   : > { %v705_v7 = vpop.f32.mrf.mxu1  ;;  %v729_v9 = vpop.f32.mrf.mxu3  ;;  %v717_v16 = vadd.f32 %v716_v8, %v704_v14 }
  0xdb   : > { %v730_v20 = vadd.f32 %v729_v9, %v717_v16 }
  0xe0   : > { %v718_v12 = vpop.f32.mrf.mxu2 }
  0xe1   : > { %v731_v13 = vpop.f32.mrf.mxu3 }
  0xe8   : > { %v768_v17 = vpop.f32.mrf.mxu2 }
  0xf0   : > { %v742_v21 = vpop.f32.mrf.mxu0  ;;  %v770_v26 = vpop.f32.mrf.mxu2 }
  0xf1   : > { %v755_v22 = vpop.f32.mrf.mxu1  ;;  %v743_v24 = vadd.f32 %v742_v21, %v730_v20 }
  0xf3   : > { %v756_v25 = vadd.f32 %v755_v22, %v743_v24 }
  0xf5   : > { %v769_v27 = vadd.f32 %v768_v17, %v756_v25 }
  0xf7   : > { %v781_v28 = vsel %vm778_vm1, %v769_v27, 0.0  ;;  %772 = vst [vmem:[%s236_s22] sm:$0xff] %v769_v27 }
  0xf8   : > { %v782_v29 = vrot.slane %v781_v28, 4  ;;  %v788_v30 = vmul.f32 %v781_v28, %v781_v28  ;;  %v744_v31 = vpop.f32.mrf.mxu0 }
  0xf9   : > { %v757_v32 = vpop.f32.mrf.mxu1 }
  0xfa   : > { %1371 = shalt.err (!%p1368_p8)
}
  0xfb   : > { %1225 = dma.vmem_to_hbm [thread:$0]  (%p1535_p13), %s820_s26, 128, %s822_s27, %s802_s28   ;;  %v783_v33 = vadd.f32 %v782_v29, %v781_v28  ;;  %v789_v34 = vrot.slane %v788_v30, 4  ;;  %vm795_vm2 = vcmp.eq.s32.totalorder %v775_v18, 0  ;;  %vm797_vm3 = vcmp.eq.s32.totalorder %v775_v18, 1 }
  0xfc   : > { %s831_s21 = scalar_lea.hbm %s1647_s4, %s1588_s7  ;;  %s243_s24 = scalar_lea.vmem [#allocation8], %s956_s12 }
  0xfd   : > { %v784_v35 = vrot.slane %v783_v33, 2  ;;  %v790_v36 = vadd.f32 %v789_v34, %v788_v30  ;;  %s833_s25 = sshll.u32 %s243_s24, 4  ;;  %s835_s22 = sshll.u32 %s831_s21, 4  ;;  %s834_s25 = int_to_ptr.vmem [resolvable:$true] %s833_s25  ;;  %s836_s22 = int_to_ptr.hbm [resolvable:$true] %s835_s22 }
  0xfe   : > { %s807_s26 = scalar_lea.sflag [#allocation9], %s1566_s9  ;;  %s1386_s27 = sshra.s32 %s836_s22, 4  ;;  %s1387_s27 = int_to_ptr.hbm [resolvable:$true] %s1386_s27 }
  0xff   : > { %v785_v37 = vadd.f32 %v784_v35, %v783_v33  ;;  %v791_v38 = vrot.slane %v790_v36, 2  ;;  %s1388_s7 = scalar_lea.hbm %s1387_s27, 8  ;;  %s1392_s12 = scalar_lea.hbm %s1647_s4, 24 }
 0x100   : > { %p1389_p9 = scmp.ne.s32.totalorder %s1387_s27, %s1388_s7  ;;  %p1393_p0 = scmp.lt.s32.totalorder %s1387_s27, %s1647_s4 }
 0x101   : > { %v786_v39 = vrot.slane %v785_v37, 1  ;;  %v792_v40 = vadd.f32 %v791_v38, %v790_v36  ;;  %p1394_p2 = scmp.lt.s32.totalorder %s1392_s12, %s1388_s7 }
 0x102   : > { %p1390_p10 = pnand %p1389_p9, %p1535_p13 }
 0x103   : > { %v787_v41 = vadd.f32 %v786_v39, %v785_v37  ;;  %v793_v42 = vrot.slane %v792_v40, 1  ;;  %p1395_p1 = por %p1394_p2, %p1393_p0 }
 0x104   : > { %p1391_p11 = pneg %p1390_p10 }
 0x105   : > { %v794_v43 = vadd.f32 %v793_v42, %v792_v40  ;;  %v796_v44 = vsel %vm795_vm2, %v787_v41, 0.0 }
 0x106   : > { %p1396_p3 = pnand %p1395_p1, %p1391_p11 }
 0x107   : > { %v798_v45 = vsel %vm797_vm3, %v794_v43, 0.0 }
 0x108   : > { %v799_v46 = vadd.f32 %v798_v45, %v796_v44 }
 0x10a   : > { %800 = vst [vmem:[%s243_s24] sm:$0xff] %v799_v46 }
 0x10b   : > { %1399 = shalt.err (!%p1396_p3)
}
 0x10c   : > { %1226 = dma.vmem_to_hbm [thread:$0]  (%p1535_p13), %s834_s25, 128, %s836_s22, %s807_s26  }
 0x10d PF: > { %p1247_p12 = scmp.ge.s32.totalorder %s1446_s18, 2  ;;  %s847_s9 = sand.u32 1, %s1434_s15  }
 0x10e   : > { %s848_s13 = scalar_lea.sflag [#allocation4], %s847_s9 }
 0x10f   : > { %p1238_p5 = pnand %p1247_p12, %p1541_p4 }
 0x111   : > { %p1239_p6 = pneg %p1238_p5 }
 0x113   : > { %1425 = dma.done.wait (%p1239_p6), %s848_s13, 128  }
 0x114   : > { %1427 = vsyncadd (%p1239_p6), %s848_s13, 4294967168  ;;  %s858_s11 = scalar_lea.sflag [#allocation9], %s847_s9 }
 0x115   : > { %1429 = dma.done.wait (%p1239_p6), %s858_s11, 128  }
 0x116   : > { %1431 = vsyncadd (%p1239_p6), %s858_s11, 4294967168  ;;  %p22_p13 = scmp.ge.s32.totalorder %s1515_s29, 5   ;;  %s1655_s15 = smov %s1438_s16 }
 0x117   : > { %s1656_s16 = smov %s1442_s17  ;;  %s1657_s17 = smov %s1527_s6 }
 0x118   : > { %s1658_s18 = smov %s1515_s29  ;;  %24 = sbr.rel (!%p22_p13) target bundleno = 10 (0xa), region = 98 }
 0x11d   :  { %864 = vsyncpa [#allocation3], 1 }
 0x11e   :  { %866 = vsyncpa [#allocation3 + $0x1], 1 }
 0x11f   :  { %867 = vsyncpa [#allocation6], 1 }
 0x120   :  { %868 = vsyncpa [#allocation4], 1 }
 0x121   :  { %870 = vsyncpa [#allocation4 + $0x1], 1 }
 0x122   :  { %871 = vsyncpa [#allocation9], 1 }
 0x123   :  { %873 = vsyncpa [#allocation9 + $0x1], 1 }

</bundles_post_ra>
